<compile_context>
chip_gen: v5e
topology: v5e:2x2
jax: 0.10.0
libtpu: 0.0.40
codegen_flags: <defaults>
</compile_context>

<pallas_src>
import jax
import jax.numpy as jnp
from jax.experimental import pallas as pl
from jax.experimental.pallas import tpu as pltpu


def _round_up(n, m):
    return ((n + m - 1) // m) * m


def _make_mlp_kernel(n_layers):
    """Fused n-layer MLP on one batch tile: Linear(+ReLU except last), narrow output store."""

    def kernel(*refs):
        x_ref = refs[0]
        mean_ref = refs[-1]

        h = x_ref[...]
        for layer in range(n_layers):
            w = refs[1 + 2 * layer][...]
            b = refs[2 + 2 * layer][...]          # (1, out_features) -> broadcasts over rows
            h = jnp.dot(h, w, preferred_element_type=jnp.float32) + b
            if layer < n_layers - 1:
                h = jnp.maximum(h, 0.0)

        mean_ref[...] = h.astype(mean_ref.dtype)   # (TB, action_dim) narrow block

    return kernel


def policy_net_continuous_forward(x, params, *, block_batch=2048):
    """Runs the fused MLP over a batch grid; std is passed through untouched."""
    *wb, std = params
    n_layers = len(wb) // 2
    batch, state_dim = x.shape
    action_dim = wb[-2].shape[1]

    # Batch tile: multiple of 8 sublanes, capped by the (rounded-up) batch size.
    tb = _round_up(min(block_batch, _round_up(batch, 8)), 8)
    grid = (pl.cdiv(batch, tb),)   # partial last block handled by Pallas (no jnp.pad of x)

    # Weights/biases: full-array blocks with constant index_map -> VMEM-resident across the
    # whole grid (no re-DMA per batch tile).
    def resident(a):
        shape = a.shape
        return pl.BlockSpec(shape, lambda i: (0,) * len(shape))

    in_specs = [pl.BlockSpec((tb, state_dim), lambda i: (i, 0))]   # streamed activations
    in_specs += [resident(a) for a in wb]

    mean = pl.pallas_call(
        _make_mlp_kernel(n_layers),
        out_shape=jax.ShapeDtypeStruct((batch, action_dim), jnp.float32),
        grid=grid,
        in_specs=in_specs,
        # Narrow output block: last dim == full array dim, so the (8,128) rule is satisfied;
        # HBM destination rows are contiguous, total write traffic = batch * action_dim * 4 B.
        out_specs=pl.BlockSpec((tb, action_dim), lambda i: (i, 0)),
        compiler_params=pltpu.CompilerParams(
            dimension_semantics=("parallel",)),
    )(x, *wb)

    # std is a bare parameter in the PyTorch module; no compute needed.
    return mean, std


def init_params(key, state_dim, hidden_dim, action_dim):
    """Deterministic init mirroring PyTorch nn.Linear default U[-1/sqrt(fan_in), +...]."""
    if isinstance(hidden_dim, int):
        hidden_dim = [hidden_dim]
    dims = [state_dim] + list(hidden_dim) + [action_dim]

    keys = jax.random.split(key, 2 * (len(dims) - 1))
    params = []
    for i in range(len(dims) - 1):
        fan_in, fan_out = dims[i], dims[i + 1]
        bound = 1.0 / (fan_in ** 0.5)
        w = jax.random.uniform(keys[2 * i], (fan_in, fan_out),
                               minval=-bound, maxval=bound, dtype=jnp.float32)
        b = jax.random.uniform(keys[2 * i + 1], (1, fan_out),
                               minval=-bound, maxval=bound, dtype=jnp.float32)
        params.extend([w, b])
    std = 0.1 * jnp.ones((action_dim,), dtype=jnp.float32)
    params.append(std)
    return tuple(params)


def reference_forward(x, params):
    """Pure-JAX reference for correctness checks."""
    *wb, std = params
    n_layers = len(wb) // 2
    h = x
    for layer in range(n_layers):
        h = h @ wb[2 * layer] + wb[2 * layer + 1]
        if layer < n_layers - 1:
            h = jnp.maximum(h, 0.0)
    return h, std


if __name__ == "__main__":
    state_dim = 16
    hidden_dim = [32, 32]
    action_dim = 4

    key = jax.random.PRNGKey(0)
    key_x, key_p, key_big = jax.random.split(key, 3)
    params = init_params(key_p, state_dim, hidden_dim, action_dim)

    # Small shape consistent with the module (single grid tile).
    batch = 8
    x = jax.random.normal(key_x, (batch, state_dim), dtype=jnp.float32)
    mean, std = policy_net_continuous_forward(x, params)
    mean = jax.block_until_ready(mean)
    std = jax.block_until_ready(std)

    ref_mean, ref_std = reference_forward(x, params)
    assert mean.shape == (batch, action_dim)
    assert std.shape == (action_dim,)
    assert jnp.allclose(mean, ref_mean, atol=1e-5, rtol=1e-5)
    assert jnp.allclose(std, ref_std)

    # Larger batch exercising multiple tiles and the partial (masked) boundary block,
    # now with NO input padding and NO output slicing.
    big_batch = 1000  # not a multiple of the 512-row tile -> tests boundary-block path
    xb = jax.random.normal(key_big, (big_batch, state_dim), dtype=jnp.float32)
    mean_b, _ = policy_net_continuous_forward(xb, params, block_batch=512)
    mean_b = jax.block_until_ready(mean_b)
    ref_mean_b, _ = reference_forward(xb, params)
    assert mean_b.shape == (big_batch, action_dim)
    assert jnp.all(jnp.isfinite(mean_b))
    assert jnp.allclose(mean_b, ref_mean_b, atol=1e-5, rtol=1e-5)

    print("KERNEL_OK")
</pallas_src>

<mosaic_0001>
module attributes {stable_mosaic.version = 11 : i64} {
  func.func @kernel(%arg0: i32, %arg1: memref<8x16xf32, #tpu.memory_space<vmem>>, %arg2: memref<16x32xf32, #tpu.memory_space<vmem>>, %arg3: memref<1x32xf32, #tpu.memory_space<vmem>>, %arg4: memref<32x32xf32, #tpu.memory_space<vmem>>, %arg5: memref<1x32xf32, #tpu.memory_space<vmem>>, %arg6: memref<32x4xf32, #tpu.memory_space<vmem>>, %arg7: memref<1x4xf32, #tpu.memory_space<vmem>>, %arg8: memref<8x4xf32, #tpu.memory_space<vmem>>) attributes {dimension_semantics = [#tpu.dimension_semantics<parallel>], iteration_bounds = array<i64: 1>, scalar_prefetch = 0 : i64, scratch_operands = 0 : i64, tpu.core_type = #tpu.core_type<tc>, window_params = [{transform_indices = @transform_0, window_bounds = array<i64: 8, 16>}, {pipeline_mode = #tpu.pipeline_mode<synchronous>, transform_indices = @transform_1, window_bounds = array<i64: 16, 32>}, {pipeline_mode = #tpu.pipeline_mode<synchronous>, transform_indices = @transform_2, window_bounds = array<i64: 1, 32>}, {pipeline_mode = #tpu.pipeline_mode<synchronous>, transform_indices = @transform_3, window_bounds = array<i64: 32, 32>}, {pipeline_mode = #tpu.pipeline_mode<synchronous>, transform_indices = @transform_4, window_bounds = array<i64: 1, 32>}, {pipeline_mode = #tpu.pipeline_mode<synchronous>, transform_indices = @transform_5, window_bounds = array<i64: 32, 4>}, {pipeline_mode = #tpu.pipeline_mode<synchronous>, transform_indices = @transform_6, window_bounds = array<i64: 1, 4>}, {transform_indices = @transform_7, window_bounds = array<i64: 8, 4>}]} {
    %c0 = arith.constant 0 : index
    %c0_0 = arith.constant 0 : index
    %0 = vector.load %arg1[%c0, %c0_0] : memref<8x16xf32, #tpu.memory_space<vmem>>, vector<8x16xf32>
    %c0_1 = arith.constant 0 : index
    %c0_2 = arith.constant 0 : index
    %1 = vector.load %arg2[%c0_1, %c0_2] : memref<16x32xf32, #tpu.memory_space<vmem>>, vector<16x32xf32>
    %c0_3 = arith.constant 0 : index
    %c0_4 = arith.constant 0 : index
    %2 = vector.load %arg3[%c0_3, %c0_4] : memref<1x32xf32, #tpu.memory_space<vmem>>, vector<1x32xf32>
    %cst = arith.constant dense<0.000000e+00> : vector<8x32xf32>
    %3 = tpu.matmul %0, %1, %cst {dimension_numbers = #tpu.dot_dimension_numbers<[1], [0], [0], [1], [0, 0, 1, 1], [], []>} : vector<8x16xf32>, vector<16x32xf32>, vector<8x32xf32> -> vector<8x32xf32>
    %4 = vector.broadcast %2 : vector<1x32xf32> to vector<8x32xf32>
    %5 = arith.addf %3, %4 : vector<8x32xf32>
    %cst_5 = arith.constant 0.000000e+00 : f32
    %6 = vector.broadcast %cst_5 : f32 to vector<8x32xf32>
    %7 = arith.maximumf %5, %6 : vector<8x32xf32>
    %c0_6 = arith.constant 0 : index
    %c0_7 = arith.constant 0 : index
    %8 = vector.load %arg4[%c0_6, %c0_7] : memref<32x32xf32, #tpu.memory_space<vmem>>, vector<32x32xf32>
    %c0_8 = arith.constant 0 : index
    %c0_9 = arith.constant 0 : index
    %9 = vector.load %arg5[%c0_8, %c0_9] : memref<1x32xf32, #tpu.memory_space<vmem>>, vector<1x32xf32>
    %cst_10 = arith.constant dense<0.000000e+00> : vector<8x32xf32>
    %10 = tpu.matmul %7, %8, %cst_10 {dimension_numbers = #tpu.dot_dimension_numbers<[1], [0], [0], [1], [0, 0, 1, 1], [], []>} : vector<8x32xf32>, vector<32x32xf32>, vector<8x32xf32> -> vector<8x32xf32>
    %11 = vector.broadcast %9 : vector<1x32xf32> to vector<8x32xf32>
    %12 = arith.addf %10, %11 : vector<8x32xf32>
    %cst_11 = arith.constant 0.000000e+00 : f32
    %13 = vector.broadcast %cst_11 : f32 to vector<8x32xf32>
    %14 = arith.maximumf %12, %13 : vector<8x32xf32>
    %c0_12 = arith.constant 0 : index
    %c0_13 = arith.constant 0 : index
    %15 = vector.load %arg6[%c0_12, %c0_13] : memref<32x4xf32, #tpu.memory_space<vmem>>, vector<32x4xf32>
    %c0_14 = arith.constant 0 : index
    %c0_15 = arith.constant 0 : index
    %16 = vector.load %arg7[%c0_14, %c0_15] : memref<1x4xf32, #tpu.memory_space<vmem>>, vector<1x4xf32>
    %cst_16 = arith.constant dense<0.000000e+00> : vector<8x4xf32>
    %17 = tpu.matmul %14, %15, %cst_16 {dimension_numbers = #tpu.dot_dimension_numbers<[1], [0], [0], [1], [0, 0, 1, 1], [], []>} : vector<8x32xf32>, vector<32x4xf32>, vector<8x4xf32> -> vector<8x4xf32>
    %18 = vector.broadcast %16 : vector<1x4xf32> to vector<8x4xf32>
    %19 = arith.addf %17, %18 : vector<8x4xf32>
    %c0_17 = arith.constant 0 : index
    %c0_18 = arith.constant 0 : index
    %20 = vector.load %arg8[%c0_17, %c0_18] : memref<8x4xf32, #tpu.memory_space<vmem>>, vector<8x4xf32>
    tpu.vector_store %arg8[%c0_17, %c0_18], %19 {strides = array<i32>} : memref<8x4xf32, #tpu.memory_space<vmem>>, vector<8x4xf32>,
    return
  }
  func.func @transform_0(%arg0: i32) -> (i32, i32) {
    %c0_i32 = arith.constant 0 : i32
    %c0_i32_0 = arith.constant 0 : i32
    return %arg0, %c0_i32 : i32, i32
  }
  func.func @transform_1(%arg0: i32) -> (i32, i32) {
    %c0_i32 = arith.constant 0 : i32
    %c0_i32_0 = arith.constant 0 : i32
    %c0_i32_1 = arith.constant 0 : i32
    return %c0_i32, %c0_i32_0 : i32, i32
  }
  func.func @transform_2(%arg0: i32) -> (i32, i32) {
    %c0_i32 = arith.constant 0 : i32
    %c0_i32_0 = arith.constant 0 : i32
    %c0_i32_1 = arith.constant 0 : i32
    return %c0_i32, %c0_i32_0 : i32, i32
  }
  func.func @transform_3(%arg0: i32) -> (i32, i32) {
    %c0_i32 = arith.constant 0 : i32
    %c0_i32_0 = arith.constant 0 : i32
    %c0_i32_1 = arith.constant 0 : i32
    return %c0_i32, %c0_i32_0 : i32, i32
  }
  func.func @transform_4(%arg0: i32) -> (i32, i32) {
    %c0_i32 = arith.constant 0 : i32
    %c0_i32_0 = arith.constant 0 : i32
    %c0_i32_1 = arith.constant 0 : i32
    return %c0_i32, %c0_i32_0 : i32, i32
  }
  func.func @transform_5(%arg0: i32) -> (i32, i32) {
    %c0_i32 = arith.constant 0 : i32
    %c0_i32_0 = arith.constant 0 : i32
    %c0_i32_1 = arith.constant 0 : i32
    return %c0_i32, %c0_i32_0 : i32, i32
  }
  func.func @transform_6(%arg0: i32) -> (i32, i32) {
    %c0_i32 = arith.constant 0 : i32
    %c0_i32_0 = arith.constant 0 : i32
    %c0_i32_1 = arith.constant 0 : i32
    return %c0_i32, %c0_i32_0 : i32, i32
  }
  func.func @transform_7(%arg0: i32) -> (i32, i32) {
    %c0_i32 = arith.constant 0 : i32
    %c0_i32_0 = arith.constant 0 : i32
    return %arg0, %c0_i32 : i32, i32
  }
}

</mosaic_0001>

<bundles_post_ra>
// kernel: tpu_custom_call.1
= control target key start
LH: loop header
LB: loop body
LE: loop exit
PB: predicated region body
PF: predicated region fallthrough
CT: control target
= control target key end

     0   :  { %12 = vsyncpa [#allocation3], 0  ;;  %s308_s0 = inlined_call_operand.hbm [shape: f32[8,16], index: 0, kind: input, shape index: {}]   ;;  %s309_s1 = inlined_call_operand.hbm [shape: f32[16,32], index: 1, kind: input, shape index: {}]   ;;  %s310_s2 = inlined_call_operand.vmem [shape: f32[1,32], index: 2, kind: input, shape index: {}]   ;;  %s311_s3 = inlined_call_operand.vmem [shape: f32[32,32], index: 3, kind: input, shape index: {}]   ;;  %s312_s4 = inlined_call_operand.vmem [shape: f32[1,32], index: 4, kind: input, shape index: {}]   ;;  %s313_s5 = inlined_call_operand.vmem [shape: f32[32,4], index: 5, kind: input, shape index: {}]   ;;  %s314_s6 = inlined_call_operand.vmem [shape: f32[1,4], index: 6, kind: input, shape index: {}]   ;;  %s315_s7 = inlined_call_operand.vmem [shape: f32[8,4], index: 7, kind: output, shape index: {}]  }
   0x1   :  { %s19_s26 = sshll.u32 %s308_s0, 4  ;;  %s20_s26 = int_to_ptr.hbm [resolvable:$true] %s19_s26 }
   0x2   :  { %13 = vsyncpa [#allocation5], 0  ;;  %s222_s27 = smov [#allocation2]   ;;  %s29_s8 = sshll.u32 %s309_s1, 4  ;;  %s30_s8 = int_to_ptr.hbm [resolvable:$true] %s29_s8 }
   0x3   :  { %s21_s28 = sshll.u32 %s222_s27, 4  ;;  %s223_s9 = smov [#allocation4]   ;;  %s22_s28 = int_to_ptr.vmem [resolvable:$true] %s21_s28 }
   0x4   :  { %24 = dma.hbm_to_vmem [thread:$0]  %s20_s26, 128, %s22_s28, [#allocation3]  }
   0x5   :  { %s31_s10 = sshll.u32 %s223_s9, 4  ;;  %s224_s11 = smov 128   ;;  %s32_s10 = int_to_ptr.vmem [resolvable:$true] %s31_s10 }
   0x6   :  { %s225_s12 = smov 8  }
   0x7   :  { %37 = dma.hbm_to_vmem [thread:$0]  %s30_s8, 256, %s32_s10, [#allocation5], %s224_s11, %s224_s11, %s225_s12  }
   0x8   :  { %218 = dma.done.wait [#allocation3], 128  }
   0x9   :  { %219 = vsyncadd [#allocation3], 4294967168 }
   0xa   :  { %220 = dma.done.wait [#allocation5], 256  }
   0xb   :  { %221 = vsyncadd [#allocation5], 4294967040  ;;  %v58_v0 = vld [vmem:[#allocation4 + $0x8] sm:$0xff]  ;;  %v57_v1 = vld [vmem:[#allocation4] sm:$0xff]  ;;  %vm63_vm0 = vcmask 130048   ;;  %vm96_vm1 = vcmask 261120  }
   0xc   :  { %81 = vmatpush.msra.mxu0 %v58_v0  ;;  %v56_v2 = vld [vmem:[#allocation2] sm:$0xff]  ;;  %v91_v3 = vld [vmem:[%s311_s3 + $0x18] sm:$0xff]  ;;  %v90_v4 = vld [vmem:[%s311_s3 + $0x10] sm:$0xff]  ;;  %vm152_vm2 = vcmask 31744  }
   0xd   :  { %112 = vmatpush.msra.mxu1 %v91_v3  ;;  %v89_v5 = vld [vmem:[%s311_s3 + $0x8] sm:$0xff]  ;;  %v88_v6 = vld [vmem:[%s311_s3] sm:$0xff]  ;;  %v124_v7 = vld [vmem:[%s313_s5 + $0x18] sm:$0xff] }
   0xe   :  { %82 = vmatpush.msra.mxu0 %v57_v1  ;;  %144 = vmatpush.msra.mxu2 %v124_v7  ;;  %v167_v8 = vld [vmem:[%s310_s2] ss:$0 sm:$0xff]  ;;  %v123_v12 = vld [vmem:[%s313_s5 + $0x10] sm:$0xff]  ;;  %v122_v13 = vld [vmem:[%s313_s5 + $0x8] sm:$0xff] }
   0xf   :  { %160 = vmatmul.msk.f32.vlgmr.msra.gmra.mxu0 %vm63_vm0, %v56_v2  ;;  %113 = vmatpush.msra.mxu1 %v90_v4  ;;  %v121_v14 = vld [vmem:[%s313_s5] sm:$0xff] }
  0x10   :  { %145 = vmatpush.msra.mxu2 %v123_v12  ;;  %v168_v15 = vld [vmem:[%s312_s4] ss:$0 sm:$0xff] }
  0x11   :  { %114 = vmatpush.msra.mxu1 %v89_v5  ;;  %v169_v19 = vld [vmem:[%s314_s6] ss:$0 sm:$0xff] }
  0x12   :  { %146 = vmatpush.msra.mxu2 %v122_v13 }
  0x13   :  { %115 = vmatpush.msra.mxu1 %v88_v6 }
  0x14   :  { %147 = vmatpush.msra.mxu2 %v121_v14 }
  0x8c   :  { %v84_v9 = vpop.f32.mrf.mxu0 }
  0x8d   :  { %v85_v10 = vadd.f32 %v167_v8, %v84_v9 }
  0x8f   :  { %v87_v11 = vmax.f32 %v85_v10, 0.0 }
  0x91   :  { %161 = vmatmul.msk.f32.vlgmr.msra.gmra.mxu1 %vm96_vm1, %v87_v11 }
 0x10e   :  { %v117_v16 = vpop.f32.mrf.mxu1 }
 0x10f   :  { %v118_v17 = vadd.f32 %v168_v15, %v117_v16 }
 0x111   :  { %v120_v18 = vmax.f32 %v118_v17, 0.0 }
 0x113   :  { %162 = vmatmul.msk.f32.vlgmr.msra.gmra.mxu2 %vm96_vm1, %v120_v18 }
 0x196   :  { %v149_v20 = vpop.f32.mrf.mxu2 }
 0x197   :  { %v150_v21 = vadd.f32 %v169_v19, %v149_v20 }
 0x199   :  { %153 = vst.msk [vmem:[%s315_s7] sm:$0xff] %vm152_vm2, %v150_v21 }
 0x19a   :  { %158 = vsyncpa [#allocation3], 1 }
 0x19b   :  { %159 = vsyncpa [#allocation5], 1 }

</bundles_post_ra>
